<compile_context>
chip_gen: v7x
topology: tpu7x:2x2x1
jax: 0.10.0
libtpu: 0.0.40
codegen_flags: <defaults>
</compile_context>

<pallas_src>
import functools

import jax
import jax.numpy as jnp
from jax.experimental import pallas as pl
from jax.experimental.pallas import tpu as pltpu


def _round_up(x: int, m: int) -> int:
    return (x + m - 1) // m * m


def nfm_kernel(xp_ref, rhs_ref, w1_ref, b1_ref, w2_ref, bout_ref, o_ref):
    d_pad = w1_ref.shape[0]

    # Single fused MXU pass: [x | x^2] @ [[E, 0, Wl], [0, E^2, 0]]
    #   -> acc = [sum_emb (d_pad) | sum_sq (d_pad) | linear (o_pad)]  (f32 accumulation)
    acc = jnp.dot(xp_ref[...], rhs_ref[...], preferred_element_type=jnp.float32)

    sum_emb = acc[:, :d_pad]
    sum_sq = acc[:, d_pad:2 * d_pad]
    lin = acc[:, 2 * d_pad:]

    interaction = 0.5 * (sum_emb * sum_emb - sum_sq)          # f32, cancellation-safe
    # TODO(synk): training-mode dropout (p=0.4) on `interaction` not implemented
    #             (eval-mode identity); would need pltpu.prng_seed/prng_random_bits.

    h = jnp.dot(interaction.astype(jnp.bfloat16), w1_ref[...],
                preferred_element_type=jnp.float32) + b1_ref[...]
    h = jnp.maximum(h, 0.0)
    mlp_out = jnp.dot(h.astype(jnp.bfloat16), w2_ref[...],
                      preferred_element_type=jnp.float32)

    # bout_ref = b2 + bl (pre-fused, zero-padded to the lane-dense output width)
    o_ref[...] = lin + mlp_out + bout_ref[...]


def prepare_nfm_params(emb, w1, b1, w2, b2, wl, bl):
    """One-time weight packing (padding, bf16 casts, E*E, bias fusion, block-diag RHS).

    Hoisted out of the forward path so repeated inference only touches x.
    Weight layout: E is [F, D]; Linear weights are stored transposed vs. PyTorch ([in, out]).
    """
    F, D = emb.shape
    O = w2.shape[1]
    f_pad = _round_up(F, 128)
    d_pad = _round_up(max(D, 128), 128)
    o_pad = _round_up(max(O, 128), 128)

    emb_p = jnp.pad(emb.astype(jnp.float32), ((0, f_pad - F), (0, d_pad - D)))
    emb_sq_p = emb_p * emb_p                                      # hoisted E*E
    wl_p = jnp.pad(wl.astype(jnp.float32), ((0, f_pad - F), (0, o_pad - O)))

    zfd = jnp.zeros((f_pad, d_pad), jnp.float32)
    zfo = jnp.zeros((f_pad, o_pad), jnp.float32)
    rhs_top = jnp.concatenate([emb_p, zfd, wl_p], axis=1)         # rows hit by x
    rhs_bot = jnp.concatenate([zfd, emb_sq_p, zfo], axis=1)       # rows hit by x^2
    rhs = jnp.concatenate([rhs_top, rhs_bot], axis=0).astype(jnp.bfloat16)

    w1_p = jnp.pad(w1.astype(jnp.float32),
                   ((0, d_pad - D), (0, d_pad - D))).astype(jnp.bfloat16)
    b1_p = jnp.pad(b1.astype(jnp.float32), ((0, 0), (0, d_pad - D)))
    w2_p = jnp.pad(w2.astype(jnp.float32),
                   ((0, d_pad - D), (0, o_pad - O))).astype(jnp.bfloat16)
    bout = jnp.pad((b2 + bl).astype(jnp.float32), ((0, 0), (0, o_pad - O)))

    return rhs, w1_p, b1_p, w2_p, bout


@functools.partial(jax.jit, static_argnames=("out_dim", "tile_b"))
def nfm_forward(x, rhs, w1_p, b1_p, w2_p, bout, *, out_dim, tile_b=None):
    B, F = x.shape
    two_f_pad, n_pack = rhs.shape
    f_pad = two_f_pad // 2
    d_pad = w1_p.shape[0]
    o_pad = bout.shape[1]

    if tile_b is None:
        # Only pad batch to a multiple of 16 (bf16 LHS sublane packing); cap tile at 128 so
        # large batches still get >=2 tiles for the "parallel" (megacore / 2-TC) axis.
        tile_b = max(16, _round_up(min(B, 128), 16))
    b_pad = _round_up(B, tile_b)
    nb = b_pad // tile_b

    # Per-call input prep only: pad, cast to bf16, precompute x^2, pack [x | x^2].
    x_p = jnp.pad(x, ((0, b_pad - B), (0, f_pad - F)))
    x_b = x_p.astype(jnp.bfloat16)
    xf = x_b.astype(jnp.float32)
    x_packed = jnp.concatenate([x_b, (xf * xf).astype(jnp.bfloat16)], axis=1)

    out = pl.pallas_call(
        nfm_kernel,
        out_shape=jax.ShapeDtypeStruct((b_pad, o_pad), jnp.float32),
        grid_spec=pltpu.PrefetchScalarGridSpec(
            num_scalar_prefetch=0,
            grid=(nb,),
            in_specs=[
                pl.BlockSpec((tile_b, 2 * f_pad), lambda i: (i, 0)),   # [x | x^2], streamed
                pl.BlockSpec((two_f_pad, n_pack), lambda i: (0, 0)),   # packed RHS, resident
                pl.BlockSpec((d_pad, d_pad), lambda i: (0, 0)),        # W1, resident
                pl.BlockSpec((1, d_pad), lambda i: (0, 0)),            # b1
                pl.BlockSpec((d_pad, o_pad), lambda i: (0, 0)),        # W2, resident
                pl.BlockSpec((1, o_pad), lambda i: (0, 0)),            # b2 + bl
            ],
            out_specs=pl.BlockSpec((tile_b, o_pad), lambda i: (i, 0)),
        ),
        compiler_params=pltpu.CompilerParams(
            dimension_semantics=("parallel",),
        ),
    )(x_packed, rhs, w1_p, b1_p, w2_p, bout)

    return out[:B, :out_dim]


def nfm_reference_matched(x, emb, w1, b1, w2, b2, wl, bl):
    """Pure-JAX reference mirroring the kernel's mixed precision (bf16 MXU / f32 accum)."""
    xb = x.astype(jnp.bfloat16)
    eb = emb.astype(jnp.bfloat16)
    esq = (emb * emb).astype(jnp.bfloat16)
    xf = xb.astype(jnp.float32)
    xsq = (xf * xf).astype(jnp.bfloat16)
    sum_emb = jnp.dot(xb, eb, preferred_element_type=jnp.float32)
    sum_sq = jnp.dot(xsq, esq, preferred_element_type=jnp.float32)
    inter = 0.5 * (sum_emb * sum_emb - sum_sq)
    h = jnp.maximum(
        jnp.dot(inter.astype(jnp.bfloat16), w1.astype(jnp.bfloat16),
                preferred_element_type=jnp.float32) + b1, 0.0)
    mlp = jnp.dot(h.astype(jnp.bfloat16), w2.astype(jnp.bfloat16),
                  preferred_element_type=jnp.float32) + b2
    lin = jnp.dot(xb, wl.astype(jnp.bfloat16), preferred_element_type=jnp.float32) + bl
    return lin + mlp


def nfm_reference_f32(x, emb, w1, b1, w2, b2, wl, bl):
    """Full-f32 reference of the original module semantics."""
    sum_emb = x @ emb
    sum_sq = (x * x) @ (emb * emb)
    inter = 0.5 * (sum_emb ** 2 - sum_sq)
    h = jnp.maximum(inter @ w1 + b1, 0.0)
    return x @ wl + bl + h @ w2 + b2


if __name__ == "__main__":
    B = 8     # batch
    F = 256   # num_sae_features
    D = 64    # embedding_dim
    O = 8     # output_dim

    key = jax.random.PRNGKey(0)
    kx, ke, k1, kb1, k2, kb2, kl, kbl = jax.random.split(key, 8)

    x = jax.random.uniform(kx, (B, F), jnp.float32)            # SAE activations (>=0)
    emb = jax.random.normal(ke, (F, D), jnp.float32) * 0.05    # nn.Embedding(F, D).weight
    w1 = jax.random.normal(k1, (D, D), jnp.float32) * 0.05     # Linear(D, D).weight.T
    b1 = jax.random.normal(kb1, (1, D), jnp.float32) * 0.05
    w2 = jax.random.normal(k2, (D, O), jnp.float32) * 0.05     # Linear(D, O).weight.T
    b2 = jax.random.normal(kb2, (1, O), jnp.float32) * 0.05
    wl = jax.random.normal(kl, (F, O), jnp.float32) * 0.05     # Linear(F, O).weight.T
    bl = jax.random.normal(kbl, (1, O), jnp.float32) * 0.05

    # One-time weight packing (hoisted out of the per-call forward path).
    params = prepare_nfm_params(emb, w1, b1, w2, b2, wl, bl)

    out = jax.block_until_ready(nfm_forward(x, *params, out_dim=O))
    assert out.shape == (B, O)

    ref_matched = nfm_reference_matched(x, emb, w1, b1, w2, b2, wl, bl)
    ref_f32 = nfm_reference_f32(x, emb, w1, b1, w2, b2, wl, bl)

    assert jnp.allclose(out, ref_matched, atol=1e-3, rtol=1e-3), \
        "mismatch vs. matched-precision (bf16-operand) reference"
    assert jnp.allclose(out, ref_f32, atol=2e-2, rtol=2e-2), \
        "mismatch vs. full-f32 reference"

    print("KERNEL_OK")
</pallas_src>

<mosaic_0001>
module attributes {stable_mosaic.version = 11 : i64} {
  func.func @nfm_kernel(%arg0: i32, %arg1: memref<16x512xbf16, #tpu.memory_space<vmem>>, %arg2: memref<512x384xbf16, #tpu.memory_space<vmem>>, %arg3: memref<128x128xbf16, #tpu.memory_space<vmem>>, %arg4: memref<1x128xf32, #tpu.memory_space<vmem>>, %arg5: memref<128x128xbf16, #tpu.memory_space<vmem>>, %arg6: memref<1x128xf32, #tpu.memory_space<vmem>>, %arg7: memref<16x128xf32, #tpu.memory_space<vmem>>) attributes {dimension_semantics = [#tpu.dimension_semantics<parallel>], iteration_bounds = array<i64: 1>, scalar_prefetch = 0 : i64, scratch_operands = 0 : i64, tpu.core_type = #tpu.core_type<tc>, window_params = [{transform_indices = @transform_0, window_bounds = array<i64: 16, 512>}, {pipeline_mode = #tpu.pipeline_mode<synchronous>, transform_indices = @transform_1, window_bounds = array<i64: 512, 384>}, {pipeline_mode = #tpu.pipeline_mode<synchronous>, transform_indices = @transform_2, window_bounds = array<i64: 128, 128>}, {pipeline_mode = #tpu.pipeline_mode<synchronous>, transform_indices = @transform_3, window_bounds = array<i64: 1, 128>}, {pipeline_mode = #tpu.pipeline_mode<synchronous>, transform_indices = @transform_4, window_bounds = array<i64: 128, 128>}, {pipeline_mode = #tpu.pipeline_mode<synchronous>, transform_indices = @transform_5, window_bounds = array<i64: 1, 128>}, {transform_indices = @transform_6, window_bounds = array<i64: 16, 128>}]} {
    %c0 = arith.constant 0 : index
    %c0_0 = arith.constant 0 : index
    %0 = vector.load %arg1[%c0, %c0_0] : memref<16x512xbf16, #tpu.memory_space<vmem>>, vector<16x512xbf16>
    %c0_1 = arith.constant 0 : index
    %c0_2 = arith.constant 0 : index
    %1 = vector.load %arg2[%c0_1, %c0_2] : memref<512x384xbf16, #tpu.memory_space<vmem>>, vector<512x384xbf16>
    %cst = arith.constant dense<0.000000e+00> : vector<16x384xf32>
    %2 = tpu.matmul %0, %1, %cst {dimension_numbers = #tpu.dot_dimension_numbers<[1], [0], [0], [1], [0, 0, 1, 1], [], []>} : vector<16x512xbf16>, vector<512x384xbf16>, vector<16x384xf32> -> vector<16x384xf32>
    %3 = vector.extract_strided_slice %2 {offsets = [0, 0], sizes = [16, 128], strides = [1, 1]} : vector<16x384xf32> to vector<16x128xf32>
    %4 = vector.extract_strided_slice %2 {offsets = [0, 128], sizes = [16, 128], strides = [1, 1]} : vector<16x384xf32> to vector<16x128xf32>
    %5 = vector.extract_strided_slice %2 {offsets = [0, 256], sizes = [16, 128], strides = [1, 1]} : vector<16x384xf32> to vector<16x128xf32>
    %6 = arith.mulf %3, %3 : vector<16x128xf32>
    %7 = arith.subf %6, %4 : vector<16x128xf32>
    %cst_3 = arith.constant 5.000000e-01 : f32
    %8 = vector.broadcast %cst_3 : f32 to vector<16x128xf32>
    %9 = arith.mulf %8, %7 : vector<16x128xf32>
    %10 = arith.truncf %9 : vector<16x128xf32> to vector<16x128xbf16>
    %c0_4 = arith.constant 0 : index
    %c0_5 = arith.constant 0 : index
    %11 = vector.load %arg3[%c0_4, %c0_5] : memref<128x128xbf16, #tpu.memory_space<vmem>>, vector<128x128xbf16>
    %cst_6 = arith.constant dense<0.000000e+00> : vector<16x128xf32>
    %12 = tpu.matmul %10, %11, %cst_6 {dimension_numbers = #tpu.dot_dimension_numbers<[1], [0], [0], [1], [0, 0, 1, 1], [], []>} : vector<16x128xbf16>, vector<128x128xbf16>, vector<16x128xf32> -> vector<16x128xf32>
    %c0_7 = arith.constant 0 : index
    %c0_8 = arith.constant 0 : index
    %13 = vector.load %arg4[%c0_7, %c0_8] : memref<1x128xf32, #tpu.memory_space<vmem>>, vector<1x128xf32>
    %14 = vector.broadcast %13 : vector<1x128xf32> to vector<16x128xf32>
    %15 = arith.addf %12, %14 : vector<16x128xf32>
    %cst_9 = arith.constant 0.000000e+00 : f32
    %16 = vector.broadcast %cst_9 : f32 to vector<16x128xf32>
    %17 = arith.maximumf %15, %16 : vector<16x128xf32>
    %18 = arith.truncf %17 : vector<16x128xf32> to vector<16x128xbf16>
    %c0_10 = arith.constant 0 : index
    %c0_11 = arith.constant 0 : index
    %19 = vector.load %arg5[%c0_10, %c0_11] : memref<128x128xbf16, #tpu.memory_space<vmem>>, vector<128x128xbf16>
    %cst_12 = arith.constant dense<0.000000e+00> : vector<16x128xf32>
    %20 = tpu.matmul %18, %19, %cst_12 {dimension_numbers = #tpu.dot_dimension_numbers<[1], [0], [0], [1], [0, 0, 1, 1], [], []>} : vector<16x128xbf16>, vector<128x128xbf16>, vector<16x128xf32> -> vector<16x128xf32>
    %21 = arith.addf %5, %20 : vector<16x128xf32>
    %c0_13 = arith.constant 0 : index
    %c0_14 = arith.constant 0 : index
    %22 = vector.load %arg6[%c0_13, %c0_14] : memref<1x128xf32, #tpu.memory_space<vmem>>, vector<1x128xf32>
    %23 = vector.broadcast %22 : vector<1x128xf32> to vector<16x128xf32>
    %24 = arith.addf %21, %23 : vector<16x128xf32>
    %c0_15 = arith.constant 0 : index
    %c0_16 = arith.constant 0 : index
    %25 = vector.load %arg7[%c0_15, %c0_16] : memref<16x128xf32, #tpu.memory_space<vmem>>, vector<16x128xf32>
    tpu.vector_store %arg7[%c0_15, %c0_16], %24 {strides = array<i32>} : memref<16x128xf32, #tpu.memory_space<vmem>>, vector<16x128xf32>,
    return
  }
  func.func @transform_0(%arg0: i32) -> (i32, i32) {
    %c0_i32 = arith.constant 0 : i32
    %c0_i32_0 = arith.constant 0 : i32
    return %arg0, %c0_i32 : i32, i32
  }
  func.func @transform_1(%arg0: i32) -> (i32, i32) {
    %c0_i32 = arith.constant 0 : i32
    %c0_i32_0 = arith.constant 0 : i32
    %c0_i32_1 = arith.constant 0 : i32
    return %c0_i32, %c0_i32_0 : i32, i32
  }
  func.func @transform_2(%arg0: i32) -> (i32, i32) {
    %c0_i32 = arith.constant 0 : i32
    %c0_i32_0 = arith.constant 0 : i32
    %c0_i32_1 = arith.constant 0 : i32
    return %c0_i32, %c0_i32_0 : i32, i32
  }
  func.func @transform_3(%arg0: i32) -> (i32, i32) {
    %c0_i32 = arith.constant 0 : i32
    %c0_i32_0 = arith.constant 0 : i32
    %c0_i32_1 = arith.constant 0 : i32
    return %c0_i32, %c0_i32_0 : i32, i32
  }
  func.func @transform_4(%arg0: i32) -> (i32, i32) {
    %c0_i32 = arith.constant 0 : i32
    %c0_i32_0 = arith.constant 0 : i32
    %c0_i32_1 = arith.constant 0 : i32
    return %c0_i32, %c0_i32_0 : i32, i32
  }
  func.func @transform_5(%arg0: i32) -> (i32, i32) {
    %c0_i32 = arith.constant 0 : i32
    %c0_i32_0 = arith.constant 0 : i32
    %c0_i32_1 = arith.constant 0 : i32
    return %c0_i32, %c0_i32_0 : i32, i32
  }
  func.func @transform_6(%arg0: i32) -> (i32, i32) {
    %c0_i32 = arith.constant 0 : i32
    %c0_i32_0 = arith.constant 0 : i32
    return %arg0, %c0_i32 : i32, i32
  }
}

</mosaic_0001>

<bundles_post_ra>
// kernel: nfm_forward.1
= control target key start
LH: loop header
LB: loop body
LE: loop exit
PB: predicated region body
PF: predicated region fallthrough
CT: control target
= control target key end

     0   :  { %11 = vsyncpa [#allocation3], 0  ;;  %s1518_s21 = smov [#allocation2]   ;;  %s1662_s0 = inlined_call_operand.vmem [shape: bf16[16,512], index: 0, kind: input, shape index: {}]   ;;  %s1663_s1 = inlined_call_operand.hbm [shape: bf16[512,384], index: 1, kind: input, shape index: {}]   ;;  %s1664_s2 = inlined_call_operand.vmem [shape: bf16[128,128], index: 2, kind: input, shape index: {}]   ;;  %s1665_s3 = inlined_call_operand.vmem [shape: f32[1,128], index: 3, kind: input, shape index: {}]   ;;  %s1666_s4 = inlined_call_operand.vmem [shape: bf16[128,128], index: 4, kind: input, shape index: {}]   ;;  %s1667_s5 = inlined_call_operand.vmem [shape: f32[1,128], index: 5, kind: input, shape index: {}]   ;;  %s1668_s6 = inlined_call_operand.vmem [shape: f32[16,128], index: 6, kind: output, shape index: {}]  }
   0x1   :  { %s19_s22 = sshll.u32 %s1518_s21, 4  ;;  %s1494_s25 = scalar_lea.hbm %s1663_s1, 12288  ;;  %s20_s22 = int_to_ptr.vmem [resolvable:$true] %s19_s22 }
   0x2   :  { %p1495_p0 = scmp.ne.s32.totalorder %s1663_s1, %s1494_s25  ;;  %p1498_p1 = scmp.lt.u32.totalorder %s1494_s25, %s1663_s1 }
   0x4   :  { %p1500_p2 = pnand %p1498_p1, %p1495_p0 }
   0x6   :  { %1503 = shalt.err (!%p1500_p2)
}
   0x7   :  { %s1504_s30 = scalar_lea.vmem %s20_s22, 12288  ;;  %p1509_p4 = scmp.lt.s32.totalorder %s20_s22, %s20_s22 }
   0x8   :  { %p1505_p3 = scmp.ne.s32.totalorder %s20_s22, %s1504_s30  ;;  %p1510_p5 = scmp.lt.s32.totalorder %s1504_s30, %s1504_s30 }
   0xa   :  { %p1511_p6 = por %p1510_p5, %p1509_p4 }
   0xc   :  { %p1512_p7 = pnand %p1511_p6, %p1505_p3 }
   0xe   :  { %1515 = shalt.err (!%p1512_p7)
}
   0xf   :  { %s1519_s7 = smov 192   ;;  %s1520_s8 = smov 12  }
  0x10   :  { %25 = dma.hbm_to_vmem [thread:$0]  %s1663_s1, 12288, %s20_s22, [#allocation3], %s1519_s7, %s1519_s7, %s1520_s8  }
  0x11   :  { %1516 = dma.done.wait [#allocation3], 12288  }
  0x12   :  { %1517 = vsyncadd [#allocation3], 4294955008  ;;  %v1344_v0 = vld [vmem:[#allocation2 + $0x4] ss:$12 sps:$4 sm:$0xff]   ;;  %v1346_v1 = vld [vmem:[#allocation2] ss:$12 sps:$4 sm:$0xff]  }
  0x13   :  { %702 = vmatprep.subr.bf16.mxu0 %v1344_v0  ;;  %v1347_v2 = vld [vmem:[#allocation2 + $0x1c] ss:$12 sps:$4 sm:$0xff]   ;;  %v1349_v3 = vld [vmem:[#allocation2 + $0x18] ss:$12 sps:$4 sm:$0xff]   ;;  %v1350_v4 = vld [vmem:[#allocation2 + $0x34] ss:$12 sps:$4 sm:$0xff]  }
  0x14   :  { %703 = vmatpush1.bf16.msra.mxu0 %v1346_v1  ;;  %v1352_v5 = vld [vmem:[#allocation2 + $0x30] ss:$12 sps:$4 sm:$0xff]   ;;  %v1353_v6 = vld [vmem:[#allocation2 + $0x4c] ss:$12 sps:$4 sm:$0xff]   ;;  %v1355_v7 = vld [vmem:[#allocation2 + $0x48] ss:$12 sps:$4 sm:$0xff]  }
  0x15   :  { %704 = vmatprep.subr.bf16.mxu0 %v1347_v2  ;;  %v1356_v8 = vld [vmem:[#allocation2 + $0x64] ss:$12 sps:$4 sm:$0xff]   ;;  %v1358_v9 = vld [vmem:[#allocation2 + $0x60] ss:$12 sps:$4 sm:$0xff]   ;;  %v1359_v10 = vld [vmem:[#allocation2 + $0x7c] ss:$12 sps:$4 sm:$0xff]  }
  0x16   :  { %v1361_v11 = vld [vmem:[#allocation2 + $0x78] ss:$12 sps:$4 sm:$0xff]   ;;  %v1362_v12 = vld [vmem:[#allocation2 + $0x94] ss:$12 sps:$4 sm:$0xff]   ;;  %v1364_v14 = vld [vmem:[#allocation2 + $0x90] ss:$12 sps:$4 sm:$0xff]  }
  0x17   :  { %v1394_v13 = vld [vmem:[%s1662_s0 + $0x4] ss:$16 sps:$4 sm:$0xff]   ;;  %v1365_v15 = vld [vmem:[#allocation2 + $0xac] ss:$12 sps:$4 sm:$0xff]   ;;  %v1371_v19 = vld [vmem:[#allocation2 + $0xdc] ss:$12 sps:$4 sm:$0xff]  }
  0x18   :  { %705 = vmatpush1.bf16.msra.mxu0 %v1349_v3  ;;  %734 = vmatprep.mubr.bf16.mxu0 %v1394_v13  ;;  %v1367_v16 = vld [vmem:[#allocation2 + $0xa8] ss:$12 sps:$4 sm:$0xff]   ;;  %v1368_v17 = vld [vmem:[#allocation2 + $0xc4] ss:$12 sps:$4 sm:$0xff]   ;;  %v1370_v18 = vld [vmem:[#allocation2 + $0xc0] ss:$12 sps:$4 sm:$0xff]  }
  0x19   :  { %706 = vmatprep.subr.bf16.mxu0 %v1350_v4  ;;  %820 = vmatprep.mubr.bf16.mxu1 %v1394_v13  ;;  %v1373_v20 = vld [vmem:[#allocation2 + $0xd8] ss:$12 sps:$4 sm:$0xff]   ;;  %v1374_v21 = vld [vmem:[#allocation2 + $0xf4] ss:$12 sps:$4 sm:$0xff]   ;;  %v1376_v22 = vld [vmem:[#allocation2 + $0xf0] ss:$12 sps:$4 sm:$0xff]  }
  0x1a   :  { %v1377_v23 = vld [vmem:[#allocation2 + $0x10c] ss:$12 sps:$4 sm:$0xff]   ;;  %v1379_v24 = vld [vmem:[#allocation2 + $0x108] ss:$12 sps:$4 sm:$0xff]   ;;  %v1380_v25 = vld [vmem:[#allocation2 + $0x124] ss:$12 sps:$4 sm:$0xff]  }
  0x1b   :  { %v1382_v26 = vld [vmem:[#allocation2 + $0x120] ss:$12 sps:$4 sm:$0xff]   ;;  %v1383_v27 = vld [vmem:[#allocation2 + $0x13c] ss:$12 sps:$4 sm:$0xff]   ;;  %v1450_v32 = vld [vmem:[#allocation2 + $0xf8] ss:$12 sps:$4 sm:$0xff]  }
  0x1c   :  { %707 = vmatpush1.bf16.msra.mxu0 %v1352_v5  ;;  %v1446_v28 = vld [vmem:[#allocation2 + $0xc8] ss:$12 sps:$4 sm:$0xff]   ;;  %v1448_v30 = vld [vmem:[#allocation2 + $0xe0] ss:$12 sps:$4 sm:$0xff]   ;;  %v1385_v33 = vld [vmem:[#allocation2 + $0x138] ss:$12 sps:$4 sm:$0xff]  }
  0x1d   :  { %708 = vmatprep.subr.bf16.mxu0 %v1353_v6  ;;  %v1447_v29 = vld [vmem:[#allocation2 + $0x8] ss:$12 sps:$4 sm:$0xff]   ;;  %1233 = vmatprep.subr.bf16.mxu1 %v1446_v28  ;;  %v1449_v31 = vld [vmem:[#allocation2 + $0x20] ss:$12 sps:$4 sm:$0xff]   ;;  %v1451_v35 = vld [vmem:[#allocation2 + $0x38] ss:$12 sps:$4 sm:$0xff]  }
  0x1e   :  { %1234 = vmatpush3.bf16.msra.mxu1 %v1447_v29  ;;  %v1386_v34 = vld [vmem:[#allocation2 + $0x154] ss:$12 sps:$4 sm:$0xff]   ;;  %v1452_v36 = vld [vmem:[#allocation2 + $0x110] ss:$12 sps:$4 sm:$0xff]   ;;  %v1389_v38 = vld [vmem:[#allocation2 + $0x16c] ss:$12 sps:$4 sm:$0xff]  }
  0x1f   :  { %1235 = vmatprep.subr.bf16.mxu1 %v1448_v30  ;;  %v1388_v37 = vld [vmem:[#allocation2 + $0x150] ss:$12 sps:$4 sm:$0xff]   ;;  %v1454_v40 = vld [vmem:[#allocation2 + $0x128] ss:$12 sps:$4 sm:$0xff]   ;;  %v1395_v44 = vld [vmem:[#allocation2 + $0x180] ss:$12 sps:$4 sm:$0xff]  }
  0x20   :  { %709 = vmatpush1.bf16.msra.mxu0 %v1355_v7  ;;  %v1453_v39 = vld [vmem:[#allocation2 + $0x50] ss:$12 sps:$4 sm:$0xff]   ;;  %v1391_v41 = vld [vmem:[#allocation2 + $0x168] ss:$12 sps:$4 sm:$0xff]   ;;  %v1456_v46 = vld [vmem:[#allocation2 + $0x140] ss:$12 sps:$4 sm:$0xff]  }
  0x21   :  { %710 = vmatprep.subr.bf16.mxu0 %v1356_v8  ;;  %v1392_v42 = vld [vmem:[%s1662_s0] ss:$16 sps:$4 sm:$0xff]   ;;  %v1455_v45 = vld [vmem:[#allocation2 + $0x68] ss:$12 sps:$4 sm:$0xff]   ;;  %v1445_v47 = vld [vmem:[%s1662_s0 + $0xc] ss:$16 sps:$4 sm:$0xff]  }
  0x22   :  { %1236 = vmatpush3.bf16.msra.mxu1 %v1449_v31  ;;  %v1397_v43 = vld [vmem:[#allocation2 + $0x184] ss:$12 sps:$4 sm:$0xff]   ;;  %v1400_v48 = vld [vmem:[#allocation2 + $0x19c] ss:$12 sps:$4 sm:$0xff]   ;;  %v1457_v49 = vld [vmem:[#allocation2 + $0x80] ss:$12 sps:$4 sm:$0xff]  }
  0x23   :  { %1237 = vmatprep.subr.bf16.mxu1 %v1450_v32  ;;  %v1458_v50 = vld [vmem:[#allocation2 + $0x158] ss:$12 sps:$4 sm:$0xff]   ;;  %v1403_v52 = vld [vmem:[#allocation2 + $0x1b4] ss:$12 sps:$4 sm:$0xff]   ;;  %v1460_v54 = vld [vmem:[#allocation2 + $0x170] ss:$12 sps:$4 sm:$0xff]  }
  0x24   :  { %711 = vmatpush1.bf16.msra.mxu0 %v1358_v9  ;;  %v1398_v51 = vld [vmem:[#allocation2 + $0x198] ss:$12 sps:$4 sm:$0xff]   ;;  %v1401_v55 = vld [vmem:[#allocation2 + $0x1b0] ss:$12 sps:$4 sm:$0xff]   ;;  %v1462_v58 = vld [vmem:[#allocation2 + $0x248] ss:$12 sps:$4 sm:$0xff]  }
  0x25   :  { %712 = vmatprep.subr.bf16.mxu0 %v1359_v10  ;;  %v1459_v53 = vld [vmem:[#allocation2 + $0x98] ss:$12 sps:$4 sm:$0xff]   ;;  %v1461_v57 = vld [vmem:[#allocation2 + $0xb0] ss:$12 sps:$4 sm:$0xff]   ;;  %v1404_v59 = vld [vmem:[#allocation2 + $0x1c8] ss:$12 sps:$4 sm:$0xff]  }
  0x26   :  { %1238 = vmatpush3.bf16.msra.mxu1 %v1451_v35  ;;  %v1406_v56 = vld [vmem:[#allocation2 + $0x1cc] ss:$12 sps:$4 sm:$0xff]   ;;  %v1409_v60 = vld [vmem:[#allocation2 + $0x1e4] ss:$12 sps:$4 sm:$0xff]   ;;  %v1463_v61 = vld [vmem:[#allocation2 + $0x188] ss:$12 sps:$4 sm:$0xff]  }
  0x27   :  { %1239 = vmatprep.subr.bf16.mxu1 %v1452_v36  ;;  %v1464_v62 = vld [vmem:[#allocation2 + $0x260] ss:$12 sps:$4 sm:$0xff]   ;;  %v1412_v0 = vld [vmem:[#allocation2 + $0x1fc] ss:$12 sps:$4 sm:$0xff]   ;;  %v1410_v1 = vld [vmem:[#allocation2 + $0x1f8] ss:$12 sps:$4 sm:$0xff]  }
  0x28   :  { %713 = vmatpush1.bf16.msra.mxu0 %v1361_v11  ;;  %v1407_v63 = vld [vmem:[#allocation2 + $0x1e0] ss:$12 sps:$4 sm:$0xff]   ;;  %v1466_v4 = vld [vmem:[#allocation2 + $0x278] ss:$12 sps:$4 sm:$0xff]   ;;  %v1468_v6 = vld [vmem:[#allocation2 + $0x290] ss:$12 sps:$4 sm:$0xff]  }
  0x29   :  { %714 = vmatprep.subr.bf16.mxu0 %v1362_v12  ;;  %v1465_v2 = vld [vmem:[#allocation2 + $0x1a0] ss:$12 sps:$4 sm:$0xff]   ;;  %v1467_v5 = vld [vmem:[#allocation2 + $0x1b8] ss:$12 sps:$4 sm:$0xff]   ;;  %v1413_v7 = vld [vmem:[#allocation2 + $0x210] ss:$12 sps:$4 sm:$0xff]  }
  0x2a   :  { %1240 = vmatpush3.bf16.msra.mxu1 %v1453_v39  ;;  %v1415_v3 = vld [vmem:[#allocation2 + $0x214] ss:$12 sps:$4 sm:$0xff]   ;;  %v1418_v8 = vld [vmem:[#allocation2 + $0x22c] ss:$12 sps:$4 sm:$0xff]   ;;  %v1469_v9 = vld [vmem:[#allocation2 + $0x1d0] ss:$12 sps:$4 sm:$0xff]  }
  0x2b   :  { %1241 = vmatprep.subr.bf16.mxu1 %v1454_v40  ;;  %v1470_v10 = vld [vmem:[#allocation2 + $0x2a8] ss:$12 sps:$4 sm:$0xff]   ;;  %v1421_v12 = vld [vmem:[#allocation2 + $0x244] ss:$12 sps:$4 sm:$0xff]   ;;  %v1521_v30 = vmov 0.0   ;;  %v1481_v39 = vld [vmem:[%s1664_s2 + $0x18] sm:$0xff]  }
  0x2c   :  { %715 = vmatpush1.bf16.msra.mxu0 %v1364_v14  ;;  %v1416_v11 = vld [vmem:[#allocation2 + $0x228] ss:$12 sps:$4 sm:$0xff]   ;;  %v1472_v14 = vld [vmem:[#allocation2 + $0x2c0] ss:$12 sps:$4 sm:$0xff]   ;;  %vm1522_vm0 = vmmov 0  }
  0x2d   :  { %716 = vmatprep.subr.bf16.mxu0 %v1365_v15  ;;  %v1471_v13 = vld [vmem:[#allocation2 + $0x1e8] ss:$12 sps:$4 sm:$0xff]   ;;  %v1419_v15 = vld [vmem:[#allocation2 + $0x240] ss:$12 sps:$4 sm:$0xff]  }
  0x2e   :  { %1242 = vmatpush3.bf16.msra.mxu1 %v1455_v45  ;;  %v1478_v28 = vld [vmem:[%s1664_s2] sm:$0xff]   ;;  %v1443_v29 = vld [vmem:[%s1662_s0 + $0x8] ss:$16 sps:$4 sm:$0xff]   ;;  %v1480_v36 = vld [vmem:[%s1664_s2 + $0x10] sm:$0xff]  }
  0x2f   :  { %1243 = vmatprep.subr.bf16.mxu1 %v1456_v46  ;;  %v1431_v31 = vld [vmem:[#allocation2 + $0x2a0] ss:$12 sps:$4 sm:$0xff]   ;;  %v1436_v32 = vld [vmem:[#allocation2 + $0x2bc] ss:$12 sps:$4 sm:$0xff]  }
  0x30   :  { %717 = vmatpush1.bf16.msra.mxu0 %v1367_v16  ;;  %v1424_v16 = vld [vmem:[#allocation2 + $0x25c] ss:$12 sps:$4 sm:$0xff]   ;;  %v1439_v35 = vld [vmem:[#allocation2 + $0x2d4] ss:$12 sps:$4 sm:$0xff]  }
  0x31   :  { %718 = vmatprep.subr.bf16.mxu0 %v1368_v17  ;;  %v1473_v17 = vld [vmem:[#allocation2 + $0x200] ss:$12 sps:$4 sm:$0xff]   ;;  %v1440_v40 = vld [vmem:[#allocation2 + $0x2e8] ss:$12 sps:$4 sm:$0xff]  }
  0x32   :  { %1244 = vmatpush3.bf16.msra.mxu1 %v1457_v49 }
  0x33   :  { %1245 = vmatprep.subr.bf16.mxu1 %v1458_v50 }
  0x34   :  { %719 = vmatpush1.bf16.msra.mxu0 %v1370_v18  ;;  %v1474_v18 = vld [vmem:[#allocation2 + $0x2d8] ss:$12 sps:$4 sm:$0xff]  }
  0x35   :  { %720 = vmatprep.subr.bf16.mxu0 %v1371_v19  ;;  %v1422_v19 = vld [vmem:[#allocation2 + $0x258] ss:$12 sps:$4 sm:$0xff]  }
  0x36   :  { %1246 = vmatpush3.bf16.msra.mxu1 %v1459_v53 }
  0x37   :  { %1247 = vmatprep.subr.bf16.mxu1 %v1460_v54 }
  0x38   :  { %721 = vmatpush1.bf16.msra.mxu0 %v1373_v20  ;;  %v1427_v20 = vld [vmem:[#allocation2 + $0x274] ss:$12 sps:$4 sm:$0xff]  }
  0x39   :  { %722 = vmatprep.subr.bf16.mxu0 %v1374_v21  ;;  %v1475_v21 = vld [vmem:[#allocation2 + $0x218] ss:$12 sps:$4 sm:$0xff]  }
  0x3a   :  { %1248 = vmatpush3.bf16.msra.mxu1 %v1461_v57 }
  0x3b   :  { %1255 = vmatprep.subr.bf16.mxu1 %v1462_v58 }
  0x3c   :  { %723 = vmatpush1.bf16.msra.mxu0 %v1376_v22  ;;  %v1476_v22 = vld [vmem:[#allocation2 + $0x2f0] ss:$12 sps:$4 sm:$0xff]  }
  0x3d   :  { %724 = vmatprep.subr.bf16.mxu0 %v1377_v23  ;;  %821 = vmatmul.mubr.bf16.vlgmr.msra.gmra.mrb[0].mxu1 %v1392_v42  ;;  %v1425_v23 = vld [vmem:[#allocation2 + $0x270] ss:$12 sps:$4 sm:$0xff]  }
  0x3e   :  { %1256 = vmatpush3.bf16.msra.mxu1 %v1463_v61  ;;  %861 = vmatprep.mubr.bf16.mxu1 %v1445_v47 }
  0x3f   :  { %1257 = vmatprep.subr.bf16.mxu1 %v1464_v62 }
  0x40   :  { %725 = vmatpush1.bf16.msra.mxu0 %v1379_v24  ;;  %v1430_v24 = vld [vmem:[#allocation2 + $0x28c] ss:$12 sps:$4 sm:$0xff]  }
  0x41   :  { %726 = vmatprep.subr.bf16.mxu0 %v1380_v25  ;;  %v1477_v25 = vld [vmem:[#allocation2 + $0x230] ss:$12 sps:$4 sm:$0xff]  }
  0x42   :  { %1258 = vmatpush3.bf16.msra.mxu1 %v1465_v2 }
  0x43   :  { %1259 = vmatprep.subr.bf16.mxu1 %v1466_v4 }
  0x44   :  { %727 = vmatpush1.bf16.msra.mxu0 %v1382_v26  ;;  %v1428_v26 = vld [vmem:[#allocation2 + $0x288] ss:$12 sps:$4 sm:$0xff]  }
  0x45   :  { %728 = vmatprep.subr.bf16.mxu0 %v1383_v27  ;;  %v1433_v27 = vld [vmem:[#allocation2 + $0x2a4] ss:$12 sps:$4 sm:$0xff]  }
  0x46   :  { %1260 = vmatpush3.bf16.msra.mxu1 %v1467_v5  ;;  %v1487_v5 = vld [vmem:[%s1666_s4 + $0x8] sm:$0xff]  }
  0x47   :  { %1261 = vmatprep.subr.bf16.mxu1 %v1468_v6  ;;  %v1488_v6 = vld [vmem:[%s1666_s4 + $0x10] sm:$0xff]  }
  0x48   :  { %729 = vmatpush1.bf16.msra.mxu0 %v1385_v33  ;;  %v1479_v33 = vld [vmem:[%s1664_s2 + $0x8] sm:$0xff]  }
  0x49   :  { %730 = vmatprep.subr.bf16.mxu0 %v1386_v34  ;;  %v1434_v34 = vld [vmem:[#allocation2 + $0x2b8] ss:$12 sps:$4 sm:$0xff]  }
  0x4a   :  { %1262 = vmatpush3.bf16.msra.mxu1 %v1469_v9  ;;  %v1491_v9 = vld [vmem:[%s1666_s4 + $0x28] sm:$0xff]  }
  0x4b   :  { %1263 = vmatprep.subr.bf16.mxu1 %v1470_v10 }
  0x4c   :  { %731 = vmatpush1.bf16.msra.mxu0 %v1388_v37  ;;  %v1437_v37 = vld [vmem:[#allocation2 + $0x2d0] ss:$12 sps:$4 sm:$0xff]  }
  0x4d   :  { %732 = vmatprep.subr.bf16.mxu0 %v1389_v38  ;;  %v1442_v38 = vld [vmem:[#allocation2 + $0x2ec] ss:$12 sps:$4 sm:$0xff]  }
  0x4e   :  { %1264 = vmatpush3.bf16.msra.mxu1 %v1471_v13  ;;  %v1493_v13 = vld [vmem:[%s1666_s4 + $0x38] sm:$0xff]  }
  0x4f   :  { %1265 = vmatprep.subr.bf16.mxu1 %v1472_v14  ;;  %v1215_v14 = vld [vmem:[%s1665_s3] ss:$0 sm:$0xff] }
  0x50   :  { %733 = vmatpush1.bf16.msra.mxu0 %v1391_v41  ;;  %v1482_v41 = vld [vmem:[%s1664_s2 + $0x20] sm:$0xff]  }
  0x51   :  { %745 = vmatprep.subr.bf16.mxu0 %v1397_v43  ;;  %v1484_v43 = vld [vmem:[%s1664_s2 + $0x30] sm:$0xff]  }
  0x52   :  { %1266 = vmatpush3.bf16.msra.mxu1 %v1473_v17 }
  0x53   :  { %735 = vmatmul.mubr.bf16.vlgmr.msra.gmra.mrb[0].mxu0 %v1392_v42  ;;  %1267 = vmatprep.subr.bf16.mxu1 %v1474_v18  ;;  %v1483_v42 = vld [vmem:[%s1664_s2 + $0x28] sm:$0xff]  }
  0x54   :  { %746 = vmatpush1.bf16.msra.mxu0 %v1395_v44  ;;  %777 = vmatprep.mubr.bf16.mxu0 %v1445_v47  ;;  %v1485_v44 = vld [vmem:[%s1664_s2 + $0x38] sm:$0xff]  }
  0x55   :  { %747 = vmatprep.subr.bf16.mxu0 %v1400_v48 }
  0x56   :  { %1268 = vmatpush3.bf16.msra.mxu1 %v1475_v21 }
  0x57   :  { %1269 = vmatprep.subr.bf16.mxu1 %v1476_v22 }
  0x58   :  { %748 = vmatpush1.bf16.msra.mxu0 %v1398_v51 }
  0x59   :  { %749 = vmatprep.subr.bf16.mxu0 %v1403_v52 }
  0x5a   :  { %1270 = vmatpush3.bf16.msra.mxu1 %v1477_v25  ;;  %v1232_v25 = vld [vmem:[%s1667_s5] ss:$0 sm:$0xff] }
  0x5b   :  { %1295 = vmatprep.subr.bf16.mxu1 %v1521_v30 }
  0x5c   :  { %750 = vmatpush1.bf16.msra.mxu0 %v1401_v55 }
  0x5d   :  { %751 = vmatprep.subr.bf16.mxu0 %v1406_v56  ;;  %862 = vmatmul.mubr.bf16.vlgmr.msra.gmra.mrb[4].mxu1 %v1443_v29 }
  0x5e   :  { %1296 = vmatpush3.bf16.msra.mxu1 %v1478_v28  ;;  %1311 = vmatprep.mubr.msk.bf16.mxu1 %vm1522_vm0, %v1521_v30 }
  0x5f   :  { %1297 = vmatprep.subr.bf16.mxu1 %v1521_v30 }
  0x60   :  { %752 = vmatpush1.bf16.msra.mxu0 %v1404_v59 }
  0x61   :  { %753 = vmatprep.subr.bf16.mxu0 %v1409_v60 }
  0x62   :  { %1298 = vmatpush3.bf16.msra.mxu1 %v1479_v33 }
  0x63   :  { %1299 = vmatprep.subr.bf16.mxu1 %v1521_v30 }
  0x64   :  { %754 = vmatpush1.bf16.msra.mxu0 %v1407_v63 }
  0x65   :  { %755 = vmatprep.subr.bf16.mxu0 %v1412_v0 }
  0x66   :  { %1300 = vmatpush3.bf16.msra.mxu1 %v1480_v36 }
  0x67   :  { %1301 = vmatprep.subr.bf16.mxu1 %v1521_v30 }
  0x68   :  { %756 = vmatpush1.bf16.msra.mxu0 %v1410_v1 }
  0x69   :  { %757 = vmatprep.subr.bf16.mxu0 %v1415_v3  ;;  %v1486_v3 = vld [vmem:[%s1666_s4] sm:$0xff]  }
  0x6a   :  { %1302 = vmatpush3.bf16.msra.mxu1 %v1481_v39 }
  0x6b   :  { %1303 = vmatprep.subr.bf16.mxu1 %v1521_v30 }
  0x6c   :  { %758 = vmatpush1.bf16.msra.mxu0 %v1413_v7  ;;  %v1489_v7 = vld [vmem:[%s1666_s4 + $0x18] sm:$0xff]  }
  0x6d   :  { %759 = vmatprep.subr.bf16.mxu0 %v1418_v8  ;;  %v1490_v8 = vld [vmem:[%s1666_s4 + $0x20] sm:$0xff]  }
  0x6e   :  { %1304 = vmatpush3.bf16.msra.mxu1 %v1482_v41 }
  0x6f   :  { %1305 = vmatprep.subr.bf16.mxu1 %v1521_v30 }
  0x70   :  { %760 = vmatpush1.bf16.msra.mxu0 %v1416_v11 }
  0x71   :  { %761 = vmatprep.subr.bf16.mxu0 %v1421_v12  ;;  %v1492_v12 = vld [vmem:[%s1666_s4 + $0x30] sm:$0xff]  }
  0x72   :  { %1306 = vmatpush3.bf16.msra.mxu1 %v1483_v42 }
  0x73   :  { %1307 = vmatprep.subr.bf16.mxu1 %v1521_v30 }
  0x74   :  { %762 = vmatpush1.bf16.msra.mxu0 %v1419_v15 }
  0x75   :  { %763 = vmatprep.subr.bf16.mxu0 %v1424_v16 }
  0x76   :  { %1308 = vmatpush3.bf16.msra.mxu1 %v1484_v43 }
  0x77   :  { %1309 = vmatprep.subr.bf16.mxu1 %v1521_v30 }
  0x78   :  { %764 = vmatpush1.bf16.msra.mxu0 %v1422_v19 }
  0x79   :  { %765 = vmatprep.subr.bf16.mxu0 %v1427_v20 }
  0x7a   :  { %1310 = vmatpush3.bf16.msra.mxu1 %v1485_v44 }
  0x7b   :  { %1315 = vmatprep.subr.bf16.mxu1 %v1521_v30 }
  0x7c   :  { %766 = vmatpush1.bf16.msra.mxu0 %v1425_v23 }
  0x7d   :  { %767 = vmatprep.subr.bf16.mxu0 %v1430_v24 }
  0x80   :  { %768 = vmatpush1.bf16.msra.mxu0 %v1428_v26 }
  0x81   :  { %769 = vmatprep.subr.bf16.mxu0 %v1433_v27 }
  0x84   :  { %770 = vmatpush1.bf16.msra.mxu0 %v1431_v31 }
  0x85   :  { %771 = vmatprep.subr.bf16.mxu0 %v1436_v32 }
  0x88   :  { %772 = vmatpush1.bf16.msra.mxu0 %v1434_v34 }
  0x89   :  { %773 = vmatprep.subr.bf16.mxu0 %v1439_v35 }
  0x8c   :  { %774 = vmatpush1.bf16.msra.mxu0 %v1437_v37 }
  0x8d   :  { %775 = vmatprep.subr.bf16.mxu0 %v1442_v38 }
  0x90   :  { %776 = vmatpush1.bf16.msra.mxu0 %v1440_v40 }
  0x93   :  { %778 = vmatmul.mubr.bf16.vlgmr.msra.gmra.mrb[0].mxu0 %v1443_v29 }
 0x110   :  { %v1249_v45 = vpop.f32.mrb[0].mxu1 }
 0x111   :  { %v1250_v46 = vpop.f32.mrb[1].mxu1 }
 0x112   :  { %v1251_v47 = vadd.f32 %v1250_v46, %v1249_v45  ;;  %v1252_v48 = vpop.f32.mrb[2].mxu1 }
 0x113   :  { %v1253_v49 = vpop.f32.mrb[3].mxu1 }
 0x114   :  { %v1254_v50 = vadd.f32 %v1253_v49, %v1252_v48 }
 0x130   :  { %v1271_v51 = vpop.f32.mrb[4].mxu1 }
 0x131   :  { %v1272_v52 = vpop.f32.mrb[5].mxu1 }
 0x132   :  { %v1273_v53 = vadd.f32 %v1272_v52, %v1271_v51  ;;  %v1274_v54 = vpop.f32.mrb[6].mxu1 }
 0x133   :  { %v1275_v55 = vpop.f32.mrb[7].mxu1 }
 0x134   :  { %v1276_v56 = vadd.f32 %v1275_v55, %v1274_v54  ;;  %v864_v10 = vadd.f32 %v1273_v53, %v1251_v47 }
 0x136   :  { %v867_v11 = vadd.f32 %v1276_v56, %v1254_v50 }
 0x166   :  { %v779_v57 = vpop.f32.mrb[0].mxu0 }
 0x167   :  { %v870_v58 = vmul.f32 %v779_v57, %v779_v57  ;;  %v781_v59 = vpop.f32.mrb[1].mxu0 }
 0x168   :  { %v783_v60 = vpop.f32.mrb[2].mxu0 }
 0x169   :  { %v872_v61 = vsub.f32 %v870_v58, %v781_v59  ;;  %v871_v62 = vmul.f32 %v783_v60, %v783_v60  ;;  %v785_v63 = vpop.f32.mrb[3].mxu0 }
 0x16b   :  { %v873_v0 = vsub.f32 %v871_v62, %v785_v63  ;;  %v874_v1 = vmul.f32 0.5, %v872_v61 }
 0x16d   :  { %v875_v2 = vmul.f32 0.5, %v873_v0 }
 0x16f   :  { %v876_v4 = vpack.c.bf16 %v875_v2, %v874_v1 }
 0x171   :  { %1312 = vmatmul.mubr.bf16.vlgmr.msra.gmra.mrb[8].mxu1 %v876_v4 }
 0x172   :  { %1316 = vmatpush3.bf16.msra.mxu1 %v1486_v3  ;;  %1331 = vmatprep.mubr.msk.bf16.mxu1 %vm1522_vm0, %v1521_v30 }
 0x173   :  { %1317 = vmatprep.subr.bf16.mxu1 %v1521_v30 }
 0x176   :  { %1318 = vmatpush3.bf16.msra.mxu1 %v1487_v5 }
 0x177   :  { %1319 = vmatprep.subr.bf16.mxu1 %v1521_v30 }
 0x17a   :  { %1320 = vmatpush3.bf16.msra.mxu1 %v1488_v6 }
 0x17b   :  { %1321 = vmatprep.subr.bf16.mxu1 %v1521_v30 }
 0x17e   :  { %1322 = vmatpush3.bf16.msra.mxu1 %v1489_v7 }
 0x17f   :  { %1323 = vmatprep.subr.bf16.mxu1 %v1521_v30 }
 0x182   :  { %1324 = vmatpush3.bf16.msra.mxu1 %v1490_v8 }
 0x183   :  { %1325 = vmatprep.subr.bf16.mxu1 %v1521_v30 }
 0x186   :  { %1326 = vmatpush3.bf16.msra.mxu1 %v1491_v9 }
 0x187   :  { %1327 = vmatprep.subr.bf16.mxu1 %v1521_v30 }
 0x18a   :  { %1328 = vmatpush3.bf16.msra.mxu1 %v1492_v12 }
 0x18b   :  { %1329 = vmatprep.subr.bf16.mxu1 %v1521_v30 }
 0x18e   :  { %1330 = vmatpush3.bf16.msra.mxu1 %v1493_v13 }
 0x244   :  { %v982_v15 = vpop.f32.mrb[8].mxu1 }
 0x245   :  { %v983_v16 = vadd.f32 %v1215_v14, %v982_v15  ;;  %v1313_v17 = vpop.f32.mrb[9].mxu1 }
 0x246   :  { %v985_v18 = vpop.f32.mrb[10].mxu1 }
 0x247   :  { %v986_v19 = vadd.f32 %v1215_v14, %v985_v18  ;;  %v1314_v20 = vpop.f32.mrb[11].mxu1  ;;  %v989_v21 = vmax.f32 %v983_v16, 0.0 }
 0x249   :  { %v990_v22 = vmax.f32 %v986_v19, 0.0 }
 0x24b   :  { %v991_v23 = vpack.c.bf16 %v990_v22, %v989_v21 }
 0x24d   :  { %1332 = vmatmul.mubr.bf16.vlgmr.msra.gmra.mrb[12].mxu1 %v991_v23 }
 0x320   :  { %v1090_v24 = vpop.f32.mrb[12].mxu1 }
 0x321   :  { %v1097_v26 = vadd.f32 %v1090_v24, %v864_v10  ;;  %v1333_v27 = vpop.f32.mrb[13].mxu1 }
 0x322   :  { %v1093_v28 = vpop.f32.mrb[14].mxu1 }
 0x323   :  { %v1106_v29 = vadd.f32 %v1232_v25, %v1097_v26  ;;  %v1098_v30 = vadd.f32 %v1093_v28, %v867_v11  ;;  %v1334_v31 = vpop.f32.mrb[15].mxu1 }
 0x325   :  { %1108 = vst [vmem:[%s1668_s6] sm:$0xff] %v1106_v29  ;;  %v1107_v32 = vadd.f32 %v1232_v25, %v1098_v30 }
 0x327   :  { %1109 = vst [vmem:[%s1668_s6 + $0x8] sm:$0xff] %v1107_v32 }
 0x328   :  { %1114 = vsyncpa [#allocation3], 1 }

</bundles_post_ra>
